<compile_context>
chip_gen: v6e
topology: v6e:2x2x1
jax: 0.10.0
libtpu: 0.0.40
codegen_flags: <defaults>
</compile_context>

<pallas_src>
import functools

import numpy as np
import jax
import jax.numpy as jnp
from jax.experimental import pallas as pl
from jax.experimental.pallas import tpu as pltpu


# ----------------------------------------------------------------------------
# Kernel
# ----------------------------------------------------------------------------
def _make_kernel(C, NR, S, has_mask, ragged):
    """Builds the per-(batch, row-block) accumulation kernel.

    Block shapes seen by the kernel:
      t_ref, r_ref : (1, C, S, 128)   input dtype (f32 / bf16 / ...)
      m_ref        : (1, 1, S, 128)   optional external mask, native dtype
      osum_ref     : (1, 1, 128)      f32, resident across the row-block axis
      ocnt_ref     : (1, 1, 128)      f32, resident across the row-block axis
    """

    def kernel(*refs):
        if has_mask:
            t_ref, r_ref, m_ref, osum_ref, ocnt_ref = refs
        else:
            t_ref, r_ref, osum_ref, ocnt_ref = refs
            m_ref = None

        # Init resident per-batch accumulators at the first row-block.
        @pl.when(pl.program_id(1) == 0)
        def _init():
            osum_ref[...] = jnp.zeros_like(osum_ref)
            ocnt_ref[...] = jnp.zeros_like(ocnt_ref)

        # Channel reduction as a static Python loop over dense (S, 128) slabs
        # (pure VPU adds; accumulation always in f32).
        t0 = t_ref[0, 0].astype(jnp.float32)
        r0 = r_ref[0, 0].astype(jnp.float32)
        diff = jnp.abs(t0 - r0)
        tsum = t0
        rsum = r0
        for c in range(1, C):
            tc = t_ref[0, c].astype(jnp.float32)
            rc = r_ref[0, c].astype(jnp.float32)
            diff = diff + jnp.abs(tc - rc)
            tsum = tsum + tc
            rsum = rsum + rc

        valid = (tsum > 0.0) & (rsum > 0.0)

        if has_mask:
            # PyTorch: (valid * mask.float()).byte() -> nonzero only when
            # valid == 1 AND mask >= 1.
            valid = valid & (m_ref[0, 0].astype(jnp.float32) >= 1.0)

        if ragged:
            # Last row-block overruns the array; OOB rows hold undefined data.
            # Mask them out via jnp.where (multiplying would let NaN through).
            rows = (jax.lax.broadcasted_iota(jnp.int32, (S, 128), 0)
                    + pl.program_id(1) * S)
            valid = valid & (rows < NR)

        contrib = jnp.where(valid, diff, 0.0)
        ones = jnp.where(valid, 1.0, 0.0)

        # Reduce over the sublane (row) axis -> per-lane partials, accumulate
        # into the tiny resident per-batch output blocks.
        osum_ref[0] += jnp.sum(contrib, axis=0, keepdims=True)
        ocnt_ref[0] += jnp.sum(ones, axis=0, keepdims=True)

    return kernel


# ----------------------------------------------------------------------------
# pallas_call wrapper
# ----------------------------------------------------------------------------
_TARGET_BLOCK_BYTES = 2 * 1024 * 1024    # ~2 MiB of DMA per input block
_MAX_BLOCK_ROWS = 2048                   # cap on S (rows of 128 lanes)


def _choose_block_rows(NR, C, itemsize, block_rows):
    if block_rows is None:
        s = _TARGET_BLOCK_BYTES // max(1, C * 128 * itemsize)
        s = max(8, min(int(s), _MAX_BLOCK_ROWS))
    else:
        s = max(1, int(block_rows))
    if s >= NR:
        return NR                        # full-dim block (exempt from /8 rule)
    return max(8, (s // 8) * 8)          # multiple of 8 sublanes


def _partial_sums(t4, r4, m4, NR, S, ragged):
    B, C = t4.shape[0], t4.shape[1]

    in_specs = [
        pl.BlockSpec((1, C, S, 128), lambda b, j: (b, 0, j, 0)),
        pl.BlockSpec((1, C, S, 128), lambda b, j: (b, 0, j, 0)),
    ]
    args = (t4, r4)
    if m4 is not None:
        in_specs.append(pl.BlockSpec((1, 1, S, 128), lambda b, j: (b, 0, j, 0)))
        args = (t4, r4, m4)

    out_shape = (jax.ShapeDtypeStruct((B, 1, 128), jnp.float32),
                 jax.ShapeDtypeStruct((B, 1, 128), jnp.float32))
    # Output block index is constant in j -> resident per-batch accumulator.
    out_specs = (pl.BlockSpec((1, 1, 128), lambda b, j: (b, 0, 0)),
                 pl.BlockSpec((1, 1, 128), lambda b, j: (b, 0, 0)))

    kernel = _make_kernel(C, NR, S, m4 is not None, ragged)

    return pl.pallas_call(
        kernel,
        out_shape=out_shape,
        grid_spec=pltpu.PrefetchScalarGridSpec(
            num_scalar_prefetch=0,
            grid=(B, pl.cdiv(NR, S)),
            in_specs=in_specs,
            out_specs=out_specs,
        ),
        compiler_params=pltpu.CompilerParams(
            dimension_semantics=("parallel", "arbitrary"),
            vmem_limit_bytes=32 * 1024 * 1024,
        ),
    )(*args)


# ----------------------------------------------------------------------------
# PhotometricLoss.forward
# ----------------------------------------------------------------------------
def photometric_loss(target, recon, mask=None, block_rows=None):
    assert recon.ndim == 4, f"expected recon dimension to be 4, got {recon.ndim}"
    assert target.ndim == 4, f"expected target dimension to be 4, got {target.ndim}"
    assert recon.shape == target.shape, "expected recon and target to have the same size"

    B, C, H, W = target.shape
    N = H * W
    NR = -(-N // 128)              # rows of 128 lanes (ceil)
    pad = NR * 128 - N             # only nonzero when H*W % 128 != 0 (rare)

    # Keep native floating dtypes on the wire (bf16 stays bf16); upcast happens
    # inside the kernel.  Integer inputs (unusual) are upcast here.
    if not jnp.issubdtype(target.dtype, jnp.floating):
        target = target.astype(jnp.float32)
    if not jnp.issubdtype(recon.dtype, jnp.floating):
        recon = recon.astype(jnp.float32)

    def to_rows(x3):
        # (B, ch, N) -> (B, ch, NR, 128); contiguous reshapes are free.
        if pad:
            # Zero padding => channel sums are 0 => padded pixels are invalid.
            x3 = jnp.pad(x3, ((0, 0), (0, 0), (0, pad)))
        return jnp.reshape(x3, (x3.shape[0], x3.shape[1], NR, 128))

    t4 = to_rows(jnp.reshape(target, (B, C, N)))
    r4 = to_rows(jnp.reshape(recon, (B, C, N)))

    m4 = None
    if mask is not None:
        m = mask
        if m.dtype == jnp.bool_:
            m = m.astype(jnp.uint8)          # keep it 1 byte/px, no f32 cast
        m4 = to_rows(jnp.reshape(m, (B, 1, N)))

    S = _choose_block_rows(NR, C, t4.dtype.itemsize, block_rows)
    ragged = (NR % S) != 0

    osum, ocnt = _partial_sums(t4, r4, m4, NR, S, ragged)

    total = jnp.sum(osum)          # tiny (B, 1, 128) reductions
    cnt = jnp.sum(ocnt)
    # PyTorch returns 0 when there is no valid pixel (warning print omitted —
    # data-dependent host printing is not expressible under jit).
    return jnp.where(cnt > 0.0, total / jnp.maximum(cnt, 1.0), 0.0)


# ----------------------------------------------------------------------------
# Pure-JAX reference for validation
# ----------------------------------------------------------------------------
def photometric_loss_ref(target, recon, mask=None):
    t = target.astype(jnp.float32)
    r = recon.astype(jnp.float32)
    diff = jnp.sum(jnp.abs(t - r), axis=1)                             # (B,H,W)
    valid = ((jnp.sum(r, axis=1) > 0.0)
             & (jnp.sum(t, axis=1) > 0.0)).astype(jnp.float32)
    if mask is not None:
        m = jnp.reshape(mask, valid.shape).astype(jnp.float32)
        valid = jnp.where(m >= 1.0, valid, 0.0)
    cnt = jnp.sum(valid)
    return jnp.where(cnt > 0.0, jnp.sum(diff * valid) / jnp.maximum(cnt, 1.0), 0.0)


# ----------------------------------------------------------------------------
# Self-test
# ----------------------------------------------------------------------------
if __name__ == "__main__":
    key = jax.random.PRNGKey(0)
    k1, k2, k3, k4, k5 = jax.random.split(key, 5)

    def check(got, want, tol=1e-4):
        got = float(jax.block_until_ready(got))
        want = float(want)
        assert np.isfinite(got), got
        assert abs(got - want) <= tol * max(1.0, abs(want)), (got, want)

    # --- case 1/2: f32 inputs, with and without an external mask -------------
    B, C, H, W = 2, 4, 16, 16
    target = jax.random.uniform(k1, (B, C, H, W), jnp.float32, 0.0, 5.0)
    recon = jax.random.uniform(k2, (B, C, H, W), jnp.float32, 0.0, 5.0)
    # Knock out ~20% of pixels (all channels) so the validity mask is non-trivial.
    target = jnp.where(jax.random.uniform(k3, (B, 1, H, W)) < 0.2, 0.0, target)
    recon = jnp.where(jax.random.uniform(k4, (B, 1, H, W)) < 0.2, 0.0, recon)

    check(jax.jit(photometric_loss)(target, recon),
          photometric_loss_ref(target, recon))

    ext_mask = (jax.random.uniform(k5, (B, 1, H, W)) > 0.3).astype(jnp.float32)
    check(jax.jit(photometric_loss)(target, recon, ext_mask),
          photometric_loss_ref(target, recon, ext_mask))

    # --- case 3: bf16 inputs (loaded as bf16, upcast to f32 in-kernel) -------
    t_bf = target.astype(jnp.bfloat16)
    r_bf = recon.astype(jnp.bfloat16)
    check(jax.jit(photometric_loss)(t_bf, r_bf),
          photometric_loss_ref(t_bf, r_bf), tol=1e-3)

    # --- case 4: ragged row-block path (NR=10 rows, block_rows=8) ------------
    B2, C2, H2, W2 = 1, 3, 40, 32
    kk = jax.random.split(k5, 4)
    t2 = jax.random.uniform(kk[0], (B2, C2, H2, W2), jnp.float32, 0.0, 5.0)
    r2 = jax.random.uniform(kk[1], (B2, C2, H2, W2), jnp.float32, 0.0, 5.0)
    t2 = jnp.where(jax.random.uniform(kk[2], (B2, 1, H2, W2)) < 0.2, 0.0, t2)
    r2 = jnp.where(jax.random.uniform(kk[3], (B2, 1, H2, W2)) < 0.2, 0.0, r2)
    ragged_fn = jax.jit(functools.partial(photometric_loss, block_rows=8))
    check(ragged_fn(t2, r2), photometric_loss_ref(t2, r2))

    print("KERNEL_OK")
</pallas_src>

<mosaic_0001>
module attributes {stable_mosaic.version = 11 : i64} {
  func.func @kernel(%arg0: i32, %arg1: i32, %arg2: memref<1x4x2x128xf32, #tpu.memory_space<vmem>>, %arg3: memref<1x4x2x128xf32, #tpu.memory_space<vmem>>, %arg4: memref<1x1x128xf32, #tpu.memory_space<vmem>>, %arg5: memref<1x1x128xf32, #tpu.memory_space<vmem>>) attributes {dimension_semantics = [#tpu.dimension_semantics<parallel>, #tpu.dimension_semantics<arbitrary>], iteration_bounds = array<i64: 2, 1>, scalar_prefetch = 0 : i64, scratch_operands = 0 : i64, tpu.core_type = #tpu.core_type<tc>, window_params = [{transform_indices = @transform_0, window_bounds = array<i64: 1, 4, 2, 128>}, {transform_indices = @transform_1, window_bounds = array<i64: 1, 4, 2, 128>}, {transform_indices = @transform_2, window_bounds = array<i64: 1, 1, 128>}, {transform_indices = @transform_3, window_bounds = array<i64: 1, 1, 128>}]} {
    %c0_i32 = arith.constant 0 : i32
    %0 = arith.cmpi eq, %arg1, %c0_i32 : i32
    %1 = arith.extui %0 : i1 to i32
    %c0_i32_0 = arith.constant 0 : i32
    %2 = arith.cmpi ne, %1, %c0_i32_0 : i32
    scf.if %2 {
      %cst_47 = arith.constant 0.000000e+00 : f32
      %62 = vector.broadcast %cst_47 : f32 to vector<1x1x128xf32>
      %c0_48 = arith.constant 0 : index
      %c0_49 = arith.constant 0 : index
      %c0_50 = arith.constant 0 : index
      %63 = vector.load %arg4[%c0_48, %c0_49, %c0_50] : memref<1x1x128xf32, #tpu.memory_space<vmem>>, vector<1x1x128xf32>
      tpu.vector_store %arg4[%c0_48, %c0_49, %c0_50], %62 {strides = array<i32>} : memref<1x1x128xf32, #tpu.memory_space<vmem>>, vector<1x1x128xf32>,
      %cst_51 = arith.constant 0.000000e+00 : f32
      %64 = vector.broadcast %cst_51 : f32 to vector<1x1x128xf32>
      %c0_52 = arith.constant 0 : index
      %c0_53 = arith.constant 0 : index
      %c0_54 = arith.constant 0 : index
      %65 = vector.load %arg5[%c0_52, %c0_53, %c0_54] : memref<1x1x128xf32, #tpu.memory_space<vmem>>, vector<1x1x128xf32>
      tpu.vector_store %arg5[%c0_52, %c0_53, %c0_54], %64 {strides = array<i32>} : memref<1x1x128xf32, #tpu.memory_space<vmem>>, vector<1x1x128xf32>,
    } else {
    }
    %c0 = arith.constant 0 : index
    %c0_1 = arith.constant 0 : index
    %c0_2 = arith.constant 0 : index
    %c0_3 = arith.constant 0 : index
    %3 = vector.load %arg2[%c0, %c0_1, %c0_2, %c0_3] : memref<1x4x2x128xf32, #tpu.memory_space<vmem>>, vector<1x1x2x128xf32>
    %4 = vector.shape_cast %3 : vector<1x1x2x128xf32> to vector<2x128xf32>
    %c0_4 = arith.constant 0 : index
    %c0_5 = arith.constant 0 : index
    %c0_6 = arith.constant 0 : index
    %c0_7 = arith.constant 0 : index
    %5 = vector.load %arg3[%c0_4, %c0_5, %c0_6, %c0_7] : memref<1x4x2x128xf32, #tpu.memory_space<vmem>>, vector<1x1x2x128xf32>
    %6 = vector.shape_cast %5 : vector<1x1x2x128xf32> to vector<2x128xf32>
    %7 = arith.subf %4, %6 : vector<2x128xf32>
    %8 = math.absf %7 : vector<2x128xf32>
    %c0_8 = arith.constant 0 : index
    %c1 = arith.constant 1 : index
    %c0_9 = arith.constant 0 : index
    %c0_10 = arith.constant 0 : index
    %9 = vector.load %arg2[%c0_8, %c1, %c0_9, %c0_10] : memref<1x4x2x128xf32, #tpu.memory_space<vmem>>, vector<1x1x2x128xf32>
    %10 = vector.shape_cast %9 : vector<1x1x2x128xf32> to vector<2x128xf32>
    %c0_11 = arith.constant 0 : index
    %c1_12 = arith.constant 1 : index
    %c0_13 = arith.constant 0 : index
    %c0_14 = arith.constant 0 : index
    %11 = vector.load %arg3[%c0_11, %c1_12, %c0_13, %c0_14] : memref<1x4x2x128xf32, #tpu.memory_space<vmem>>, vector<1x1x2x128xf32>
    %12 = vector.shape_cast %11 : vector<1x1x2x128xf32> to vector<2x128xf32>
    %13 = arith.subf %10, %12 : vector<2x128xf32>
    %14 = math.absf %13 : vector<2x128xf32>
    %15 = arith.addf %8, %14 : vector<2x128xf32>
    %16 = arith.addf %4, %10 : vector<2x128xf32>
    %17 = arith.addf %6, %12 : vector<2x128xf32>
    %c0_15 = arith.constant 0 : index
    %c2 = arith.constant 2 : index
    %c0_16 = arith.constant 0 : index
    %c0_17 = arith.constant 0 : index
    %18 = vector.load %arg2[%c0_15, %c2, %c0_16, %c0_17] : memref<1x4x2x128xf32, #tpu.memory_space<vmem>>, vector<1x1x2x128xf32>
    %19 = vector.shape_cast %18 : vector<1x1x2x128xf32> to vector<2x128xf32>
    %c0_18 = arith.constant 0 : index
    %c2_19 = arith.constant 2 : index
    %c0_20 = arith.constant 0 : index
    %c0_21 = arith.constant 0 : index
    %20 = vector.load %arg3[%c0_18, %c2_19, %c0_20, %c0_21] : memref<1x4x2x128xf32, #tpu.memory_space<vmem>>, vector<1x1x2x128xf32>
    %21 = vector.shape_cast %20 : vector<1x1x2x128xf32> to vector<2x128xf32>
    %22 = arith.subf %19, %21 : vector<2x128xf32>
    %23 = math.absf %22 : vector<2x128xf32>
    %24 = arith.addf %15, %23 : vector<2x128xf32>
    %25 = arith.addf %16, %19 : vector<2x128xf32>
    %26 = arith.addf %17, %21 : vector<2x128xf32>
    %c0_22 = arith.constant 0 : index
    %c3 = arith.constant 3 : index
    %c0_23 = arith.constant 0 : index
    %c0_24 = arith.constant 0 : index
    %27 = vector.load %arg2[%c0_22, %c3, %c0_23, %c0_24] : memref<1x4x2x128xf32, #tpu.memory_space<vmem>>, vector<1x1x2x128xf32>
    %28 = vector.shape_cast %27 : vector<1x1x2x128xf32> to vector<2x128xf32>
    %c0_25 = arith.constant 0 : index
    %c3_26 = arith.constant 3 : index
    %c0_27 = arith.constant 0 : index
    %c0_28 = arith.constant 0 : index
    %29 = vector.load %arg3[%c0_25, %c3_26, %c0_27, %c0_28] : memref<1x4x2x128xf32, #tpu.memory_space<vmem>>, vector<1x1x2x128xf32>
    %30 = vector.shape_cast %29 : vector<1x1x2x128xf32> to vector<2x128xf32>
    %31 = arith.subf %28, %30 : vector<2x128xf32>
    %32 = math.absf %31 : vector<2x128xf32>
    %33 = arith.addf %24, %32 : vector<2x128xf32>
    %34 = arith.addf %25, %28 : vector<2x128xf32>
    %35 = arith.addf %26, %30 : vector<2x128xf32>
    %cst = arith.constant 0.000000e+00 : f32
    %36 = vector.broadcast %cst : f32 to vector<2x128xf32>
    %37 = arith.cmpf ogt, %34, %36 : vector<2x128xf32>
    %cst_29 = arith.constant 0.000000e+00 : f32
    %38 = vector.broadcast %cst_29 : f32 to vector<2x128xf32>
    %39 = arith.cmpf ogt, %35, %38 : vector<2x128xf32>
    %40 = arith.andi %37, %39 : vector<2x128xi1>
    %cst_30 = arith.constant 0.000000e+00 : f32
    %41 = vector.broadcast %cst_30 : f32 to vector<2x128xf32>
    %42 = arith.select %40, %33, %41 : vector<2x128xi1>, vector<2x128xf32>
    %cst_31 = arith.constant 1.000000e+00 : f32
    %cst_32 = arith.constant 0.000000e+00 : f32
    %43 = vector.broadcast %cst_31 : f32 to vector<2x128xf32>
    %44 = vector.broadcast %cst_32 : f32 to vector<2x128xf32>
    %45 = arith.select %40, %43, %44 : vector<2x128xi1>, vector<2x128xf32>
    %c0_33 = arith.constant 0 : index
    %c0_34 = arith.constant 0 : index
    %c0_35 = arith.constant 0 : index
    %46 = vector.load %arg4[%c0_33, %c0_34, %c0_35] : memref<1x1x128xf32, #tpu.memory_space<vmem>>, vector<1x1x128xf32>
    %47 = vector.shape_cast %46 : vector<1x1x128xf32> to vector<1x128xf32>
    %cst_36 = arith.constant dense<0.000000e+00> : vector<128xf32>
    %48 = vector.multi_reduction <add>, %42, %cst_36 [0] : vector<2x128xf32> to vector<128xf32>
    %49 = vector.shape_cast %48 : vector<128xf32> to vector<1x128xf32>
    %50 = arith.addf %47, %49 : vector<1x128xf32>
    %c0_37 = arith.constant 0 : index
    %c0_38 = arith.constant 0 : index
    %c0_39 = arith.constant 0 : index
    %51 = vector.load %arg4[%c0_37, %c0_38, %c0_39] : memref<1x1x128xf32, #tpu.memory_space<vmem>>, vector<1x1x128xf32>
    %52 = vector.shape_cast %51 : vector<1x1x128xf32> to vector<1x128xf32>
    %53 = vector.shape_cast %50 : vector<1x128xf32> to vector<1x1x128xf32>
    tpu.vector_store %arg4[%c0_37, %c0_38, %c0_39], %53 {strides = array<i32>} : memref<1x1x128xf32, #tpu.memory_space<vmem>>, vector<1x1x128xf32>,
    %c0_40 = arith.constant 0 : index
    %c0_41 = arith.constant 0 : index
    %c0_42 = arith.constant 0 : index
    %54 = vector.load %arg5[%c0_40, %c0_41, %c0_42] : memref<1x1x128xf32, #tpu.memory_space<vmem>>, vector<1x1x128xf32>
    %55 = vector.shape_cast %54 : vector<1x1x128xf32> to vector<1x128xf32>
    %cst_43 = arith.constant dense<0.000000e+00> : vector<128xf32>
    %56 = vector.multi_reduction <add>, %45, %cst_43 [0] : vector<2x128xf32> to vector<128xf32>
    %57 = vector.shape_cast %56 : vector<128xf32> to vector<1x128xf32>
    %58 = arith.addf %55, %57 : vector<1x128xf32>
    %c0_44 = arith.constant 0 : index
    %c0_45 = arith.constant 0 : index
    %c0_46 = arith.constant 0 : index
    %59 = vector.load %arg5[%c0_44, %c0_45, %c0_46] : memref<1x1x128xf32, #tpu.memory_space<vmem>>, vector<1x1x128xf32>
    %60 = vector.shape_cast %59 : vector<1x1x128xf32> to vector<1x128xf32>
    %61 = vector.shape_cast %58 : vector<1x128xf32> to vector<1x1x128xf32>
    tpu.vector_store %arg5[%c0_44, %c0_45, %c0_46], %61 {strides = array<i32>} : memref<1x1x128xf32, #tpu.memory_space<vmem>>, vector<1x1x128xf32>,
    return
  }
  func.func @transform_0(%arg0: i32, %arg1: i32) -> (i32, i32, i32, i32) {
    %c0_i32 = arith.constant 0 : i32
    %c0_i32_0 = arith.constant 0 : i32
    %c0_i32_1 = arith.constant 0 : i32
    return %arg0, %c0_i32, %arg1, %c0_i32_0 : i32, i32, i32, i32
  }
  func.func @transform_1(%arg0: i32, %arg1: i32) -> (i32, i32, i32, i32) {
    %c0_i32 = arith.constant 0 : i32
    %c0_i32_0 = arith.constant 0 : i32
    %c0_i32_1 = arith.constant 0 : i32
    return %arg0, %c0_i32, %arg1, %c0_i32_0 : i32, i32, i32, i32
  }
  func.func @transform_2(%arg0: i32, %arg1: i32) -> (i32, i32, i32) {
    %c0_i32 = arith.constant 0 : i32
    %c0_i32_0 = arith.constant 0 : i32
    %c0_i32_1 = arith.constant 0 : i32
    return %arg0, %c0_i32, %c0_i32_0 : i32, i32, i32
  }
  func.func @transform_3(%arg0: i32, %arg1: i32) -> (i32, i32, i32) {
    %c0_i32 = arith.constant 0 : i32
    %c0_i32_0 = arith.constant 0 : i32
    %c0_i32_1 = arith.constant 0 : i32
    return %arg0, %c0_i32, %c0_i32_0 : i32, i32, i32
  }
}

</mosaic_0001>

<bundles_post_ra>
// kernel: photometric_loss.1
= control target key start
LH: loop header
LB: loop body
LE: loop exit
PB: predicated region body
PF: predicated region fallthrough
CT: control target
= control target key end

     0   :  { %s486_s12 = smov 0   ;;  %s488_s13 = smov 0   ;;  %s535_s0 = inlined_call_operand.vmem [shape: f32[2,4,2,128], index: 0, kind: input, shape index: {}]   ;;  %s536_s1 = inlined_call_operand.vmem [shape: f32[2,4,2,128], index: 1, kind: input, shape index: {}]   ;;  %s537_s2 = inlined_call_operand.vmem [shape: f32[2,1,128], index: 2, kind: output, shape index: {0}]   ;;  %s538_s3 = inlined_call_operand.vmem [shape: f32[2,1,128], index: 3, kind: output, shape index: {1}]  }
   0x1   :  { %s490_s14 = smov 0  }
   0x2 LB: > { %s26_s15 = sadd.s32 1, %s459_s13  ;;  %p401_p0 = scmp.ge.s32.totalorder %s463_s14, 1  ;;  %s463_s14 = sphi %s490_s14, %s14_s14   ;;  %s459_s13 = sphi %s488_s13, %s540_s13   ;;  %s455_s12 = sphi %s486_s12, %s539_s12  }
   0x3   : > { %p28_p1 = scmp.ge.s32.totalorder %s26_s15, 2  ;;  %p172_p2 = scmp.lt.s32.totalorder %s463_s14, 3 }
   0x5   : > { %s542_s15 = smov (%p28_p1, %s26_s15), 0  ;;  %p173_p3 = pnand %p401_p0, %p172_p2 }
   0x6   : > { %p208_p4 = scmp.lt.s32.totalorder (!%p173_p3), %s455_s12, 1 }
   0x7   : > { %176 = sbr.rel (%p173_p3) target bundleno = 44 (0x2c), region = 28 }
   0xc   : > { %s544_s12 = smov (!%p208_p4, %s455_s12), 1  ;;  %v465_v0 = vmov 0.0   ;;  %vm273_vm2 = vcmask 1041408  }
   0xd   : > { %s414_s16 = sshll.u32 %s544_s12, 3  ;;  %s507_s19 = scalar_lea.vmem %s537_s2, %s544_s12 }
   0xe   : > { %s215_s22 = scalar_lea.vmem %s535_s0, %s414_s16  ;;  %s223_s25 = scalar_lea.vmem %s536_s1, %s414_s16  ;;  %234 = vst [vmem:[%s507_s19] sm:$0x1] %v465_v0 }
   0xf   : > { %v236_v1 = vld [vmem:[%s215_s22] sm:$0x3]  ;;  %v406_v3 = vld [vmem:[%s215_s22 + $0x2] sm:$0x3]  ;;  %s519_s28 = scalar_lea.vmem %s538_s3, %s544_s12  ;;  %v408_v7 = vld [vmem:[%s215_s22 + $0x4] sm:$0x3] }
  0x10   : > { %v237_v2 = vld [vmem:[%s223_s25] sm:$0x3]  ;;  %v407_v5 = vld [vmem:[%s223_s25 + $0x2] sm:$0x3]  ;;  %v247_v6 = vadd.f32 %v406_v3, %v236_v1  ;;  %v409_v8 = vld [vmem:[%s223_s25 + $0x4] sm:$0x3] }
  0x11   : > { %v238_v4 = vsub.f32 %v236_v1, %v237_v2  ;;  %235 = vst [vmem:[%s519_s28] sm:$0x1] %v465_v0  ;;  %v244_v9 = vsub.f32 %v406_v3, %v407_v5  ;;  %v248_v10 = vadd.f32 %v407_v5, %v237_v2  ;;  %v253_v11 = vsub.f32 %v408_v7, %v409_v8  ;;  %v410_v12 = vld [vmem:[%s215_s22 + $0x6] sm:$0x3] }
  0x12   : > { %v411_v13 = vld [vmem:[%s223_s25 + $0x6] sm:$0x3]  ;;  %v256_v15 = vadd.f32 %v408_v7, %v247_v6 }
  0x13   : > { %v239_v14 = vand.u32 2147483647, %v238_v4  ;;  %v262_v16 = vsub.f32 %v410_v12, %v411_v13  ;;  %v245_v17 = vand.u32 2147483647, %v244_v9  ;;  %v254_v18 = vand.u32 2147483647, %v253_v11 }
  0x14   : > { %v257_v19 = vadd.f32 %v409_v8, %v248_v10  ;;  %v265_v20 = vadd.f32 %v410_v12, %v256_v15 }
  0x15   : > { %v246_v21 = vadd.f32 %v245_v17, %v239_v14  ;;  %v263_v22 = vand.u32 2147483647, %v262_v16  ;;  %v272_v42 = vld [vmem:[%s507_s19] sm:$0x1] }
  0x16   : > { %v266_v23 = vadd.f32 %v411_v13, %v257_v19  ;;  %vm267_vm0 = vcmp.gt.f32.partialorder %v265_v20, 0.0 }
  0x17   : > { %v255_v24 = vadd.f32 %v254_v18, %v246_v21 }
  0x18   : > { %vm268_vm1 = vcmp.gt.f32.partialorder %v266_v23, 0.0  ;;  %v283_v39 = vld [vmem:[%s519_s28] sm:$0x1] }
  0x19   : > { %vm269_vm3 = vmand %vm267_vm0, %vm268_vm1  ;;  %v264_v25 = vadd.f32 %v263_v22, %v255_v24 }
  0x1a   : > { %v271_v26 = vsel %vm269_vm3, 1.0, %v465_v0 }
  0x1b   : > { %v284_v27 = vsel %vm273_vm2, %v271_v26, 0.0  ;;  %v270_v28 = vsel %vm269_vm3, %v264_v25, 0.0 }
  0x1c   : > { %v285_v29 = vrot.slane %v284_v27, 4  ;;  %v274_v30 = vsel %vm273_vm2, %v270_v28, 0.0 }
  0x1d   : > { %v275_v31 = vrot.slane %v274_v30, 4 }
  0x1e   : > { %v286_v32 = vadd.f32 %v285_v29, %v284_v27 }
  0x1f   : > { %v276_v33 = vadd.f32 %v275_v31, %v274_v30 }
  0x20   : > { %v287_v34 = vrot.slane %v286_v32, 2 }
  0x21   : > { %v277_v35 = vrot.slane %v276_v33, 2 }
  0x22   : > { %v288_v36 = vadd.f32 %v287_v34, %v286_v32 }
  0x23   : > { %v278_v37 = vadd.f32 %v277_v35, %v276_v33 }
  0x24   : > { %v289_v38 = vrot.slane %v288_v36, 1 }
  0x25   : > { %v279_v40 = vrot.slane %v278_v37, 1 }
  0x26   : > { %v290_v41 = vadd.f32 %v289_v38, %v288_v36 }
  0x27   : > { %v280_v43 = vadd.f32 %v279_v40, %v278_v37 }
  0x28   : > { %v291_v44 = vadd.f32 %v290_v41, %v283_v39 }
  0x29   : > { %v281_v45 = vadd.f32 %v280_v43, %v272_v42 }
  0x2a   : > { %292 = vst [vmem:[%s519_s28] sm:$0x1] %v291_v44 }
  0x2b   : > { %282 = vst [vmem:[%s507_s19] sm:$0x1] %v281_v45 }
  0x2c PF: > { %s14_s14 = sadd.s32 1, %s463_s14   ;;  %s539_s12 = smov %s459_s13 }
  0x2d   : > { %p11_p5 = scmp.ge.s32.totalorder %s14_s14, 4   ;;  %s540_s13 = smov %s542_s15 }
  0x2f   :  { %13 = sbr.rel (!%p11_p5) target bundleno = 2 (0x2), region = 83 }

</bundles_post_ra>
